<compile_context>
chip_gen: v6e
topology: v6e:2x2x1
jax: 0.10.0
libtpu: 0.0.40
codegen_flags: <defaults>
</compile_context>

<pallas_src>
import functools
import math

import jax
import jax.numpy as jnp
from jax.experimental import pallas as pl
from jax.experimental.pallas import tpu as pltpu

R_EARTH = 6371.0
DEG2RAD = math.pi / 180.0


# --------------------------- Stage 1: weight map ----------------------------
def weight_map_kernel(scalars_ref,       # SMEM (4,): lat0_rad, lon0_rad, cos(lat0), 1/sigma
                      lat_ref, lon_ref,  # VMEM (H, W) degrees
                      w_ref,             # VMEM (H, W) UN-normalized gaussian weights
                      wsum_ref):         # VMEM (1, 1) sum of the weights
    lat0_rad = scalars_ref[0]
    lon0_rad = scalars_ref[1]
    cos_lat0 = scalars_ref[2]
    inv_sigma = scalars_ref[3]

    lat = lat_ref[...] * DEG2RAD
    lon = lon_ref[...] * DEG2RAD
    dlat = lat - lat0_rad
    dlon = lon - lon0_rad

    sin_dlat = jnp.sin(dlat * 0.5)
    sin_dlon = jnp.sin(dlon * 0.5)
    a = sin_dlat * sin_dlat + cos_lat0 * jnp.cos(lat) * (sin_dlon * sin_dlon)
    # f32 rounding can push `a` slightly outside [0, 1] near the antipode,
    # which would make sqrt() produce NaN -> clamp.
    a = jnp.clip(a, 0.0, 1.0)
    # 2*asin(sqrt(a)) is algebraically simpler, but asin is not a guaranteed
    # Mosaic lowering; atan2 is known-good on TPU.
    c = 2.0 * jnp.arctan2(jnp.sqrt(a), jnp.sqrt(1.0 - a))
    t = (R_EARTH * c) * inv_sigma                       # dist / sigma
    w_raw = jnp.exp(-(t * t))

    w_ref[...] = w_raw
    wsum_ref[...] = jnp.sum(w_raw, keepdims=True)       # (1, 1)


# ----------------- Stage 2: pooling + MLP + softmax (tiled) ------------------
def pool_mlp_kernel(tile_h,
                    feat_ref,            # VMEM (block_b, C, tile_h, W) f32/bf16
                    w_ref,               # VMEM (H, W) resident raw weights
                    wsum_ref,            # VMEM (1, 1) weight sum
                    w1_ref, b1_ref,      # VMEM (C, 2C), (1, 2C)
                    w2_ref, b2_ref,      # VMEM (2C, O), (1, O)
                    out_ref,             # VMEM (block_b, O)
                    acc_ref):            # VMEM scratch (block_b, C, W) f32
    h = pl.program_id(1)

    @pl.when(h == 0)
    def _init():
        acc_ref[...] = jnp.zeros_like(acc_ref)

    # Slice this grid step's rows out of the resident weight map (one weight
    # DMA per call instead of one per grid step).
    start = h * tile_h
    if tile_h % 8 == 0:
        start = pl.multiple_of(start, 8)
    w_tile = w_ref[pl.ds(start, tile_h), :]                      # (tile_h, W)

    feat = feat_ref[...].astype(jnp.float32)                     # (bb, C, th, W)
    weighted = feat * w_tile[None, None, :, :]
    # Reduce only the sublane (tile_h) axis per step; the 128-lane reduce over
    # W is deferred to the finalize so the inner loop stays off the XLU.
    acc_ref[...] += jnp.sum(weighted, axis=2)                    # (bb, C, W)

    @pl.when(h == pl.num_programs(1) - 1)
    def _finalize():
        pooled = jnp.sum(acc_ref[...], axis=2)                   # (bb, C)
        # Fold in the weight-map normalization (pooling is linear in w).
        pooled = pooled * pl.reciprocal(wsum_ref[...], approx=False)
        hidden = jnp.dot(pooled, w1_ref[...],
                         preferred_element_type=jnp.float32) + b1_ref[...]
        hidden = jnp.maximum(hidden, 0.0)
        logits = jnp.dot(hidden, w2_ref[...],
                         preferred_element_type=jnp.float32) + b2_ref[...]
        # Softmax with an exact divide so rows sum to 1 to f32 precision.
        m = jnp.max(logits, axis=1, keepdims=True)
        e = jnp.exp(logits - m)
        out_ref[...] = e / jnp.sum(e, axis=1, keepdims=True)


# --------------------------------- helpers -----------------------------------
def _vmem_capacity_bytes(default=64 << 20):
    """Per-generation VMEM capacity (v5e/v6e 128 MiB, v7x 64 MiB); safe fallback."""
    try:
        info = pltpu.get_tpu_info()
        cap = int(getattr(info, "vmem_capacity_bytes", 0))
        return cap if cap > 0 else default
    except Exception:
        return default


def _choose_tiling(B, C, H, W, feat_itemsize, pipeline_budget_bytes):
    """Pick (b_pad, block_b, tile_h).  Prefer big batch blocks (amortize the
    per-grid-step overhead, bigger MXU M in the finalize), then the biggest
    spatial tile such that 2x feature block + accumulator fits the budget."""
    b_pad = ((B + 7) // 8) * 8
    if H % 8 == 0:
        th_cands = sorted((t for t in range(8, H + 1, 8) if H % t == 0), reverse=True)
    else:
        th_cands = [H]
    bb_cands = [bb for bb in range(min(b_pad, 128), 0, -8) if b_pad % bb == 0]
    for bb in bb_cands:
        acc_bytes = bb * C * W * 4
        for th in th_cands:
            feat_bytes = bb * C * th * W * feat_itemsize
            if 2 * feat_bytes + acc_bytes <= pipeline_budget_bytes:
                return b_pad, bb, th
    return b_pad, 8, th_cands[-1]


# --------------------------------- wrapper -----------------------------------
def probability_projection(features, lat_grid, lon_grid, params, lat0, lon0, sigma,
                           *, tile_h=None, block_b=None):
    """features: (B, C, H, W) f32/bf16; lat/lon: (H, W) degrees. Returns (B, O) probs."""
    B, C, H, W = features.shape
    O = params["w2"].shape[1]
    feat_itemsize = jnp.dtype(features.dtype).itemsize

    # ---- Stage 1: un-normalized gaussian weight map + its sum (once) ----
    # jnp scalar math (not Python float()) so lat0/lon0/sigma may be traced.
    lat0_rad = jnp.deg2rad(jnp.asarray(lat0, jnp.float32))
    lon0_rad = jnp.deg2rad(jnp.asarray(lon0, jnp.float32))
    inv_sigma = jnp.float32(1.0) / jnp.asarray(sigma, jnp.float32)
    scalars = jnp.stack([lat0_rad, lon0_rad, jnp.cos(lat0_rad), inv_sigma]
                        ).astype(jnp.float32)

    smem = pl.BlockSpec(memory_space=pltpu.MemorySpace.SMEM)
    vmem = pl.BlockSpec(memory_space=pltpu.MemorySpace.VMEM)
    w_raw, w_sum = pl.pallas_call(
        weight_map_kernel,
        out_shape=(jax.ShapeDtypeStruct((H, W), jnp.float32),
                   jax.ShapeDtypeStruct((1, 1), jnp.float32)),
        in_specs=[smem, vmem, vmem],
        out_specs=(vmem, vmem),
    )(scalars, lat_grid.astype(jnp.float32), lon_grid.astype(jnp.float32))

    # ---- Stage 2: tiled weighted pooling + MLP + softmax ----
    vmem_cap = _vmem_capacity_bytes()
    b_pad, bb_auto, th_auto = _choose_tiling(B, C, H, W, feat_itemsize, vmem_cap // 3)
    block_b = bb_auto if block_b is None else block_b
    if block_b <= 0 or b_pad % block_b != 0:
        block_b = bb_auto
    tile_h = th_auto if tile_h is None else tile_h
    if tile_h <= 0 or H % tile_h != 0:
        tile_h = H

    # Pad batch to a multiple of 8 (full-sublane output stores / matmul tiles);
    # padded rows are sliced off below.
    feats = features
    if b_pad != B:
        feats = jnp.pad(features, ((0, b_pad - B), (0, 0), (0, 0), (0, 0)))

    grid = (b_pad // block_b, H // tile_h)

    # Weight map, weight sum and MLP params: constant block index => resident,
    # DMA'd once per call (no per-step re-DMA).
    const_specs = [
        pl.BlockSpec((H, W), lambda i, h: (0, 0)),
        pl.BlockSpec((1, 1), lambda i, h: (0, 0)),
        pl.BlockSpec(params["w1"].shape, lambda i, h: (0, 0)),
        pl.BlockSpec(params["b1"].shape, lambda i, h: (0, 0)),
        pl.BlockSpec(params["w2"].shape, lambda i, h: (0, 0)),
        pl.BlockSpec(params["b2"].shape, lambda i, h: (0, 0)),
    ]

    # Generation-aware VMEM accounting: double-buffered feature stream + acc
    # scratch + (conservatively double-counted) resident operands, clamped to
    # 3/4 of physical capacity so a v6e-sized request never overshoots v7x.
    feat_block_bytes = block_b * C * tile_h * W * feat_itemsize
    acc_bytes = block_b * C * W * 4
    resident_bytes = (H * W * 4 + 4
                      + sum(int(v.size) * 4 for v in (params["w1"], params["b1"],
                                                      params["w2"], params["b2"]))
                      + block_b * O * 4)
    need = 2 * feat_block_bytes + acc_bytes + 2 * resident_bytes + (2 << 20)
    vmem_limit = int(min(vmem_cap * 3 // 4, max(32 << 20, need + (8 << 20))))

    out = pl.pallas_call(
        functools.partial(pool_mlp_kernel, tile_h),
        out_shape=jax.ShapeDtypeStruct((b_pad, O), jnp.float32),
        grid_spec=pltpu.PrefetchScalarGridSpec(
            num_scalar_prefetch=0,
            grid=grid,
            in_specs=[
                pl.BlockSpec((block_b, C, tile_h, W), lambda i, h: (i, 0, h, 0)),
                *const_specs,
            ],
            out_specs=pl.BlockSpec((block_b, O), lambda i, h: (i, 0)),
            scratch_shapes=[pltpu.VMEM((block_b, C, W), jnp.float32)],
        ),
        compiler_params=pltpu.CompilerParams(
            # The batch-block axis is sharded across v7x's two TensorCores when
            # b_pad // block_b >= 2.  Engaging the second core for tiny batches
            # would need a W-split parallel axis with per-core partial
            # accumulators; not done here (toy sizes are HBM-bound anyway).
            dimension_semantics=("parallel", "arbitrary"),
            vmem_limit_bytes=vmem_limit,
        ),
    )(feats, w_raw, w_sum, params["w1"], params["b1"], params["w2"], params["b2"])

    return out[:B]


# ---------------------------- pure-JAX reference ----------------------------
def reference(features, lat_grid, lon_grid, params, lat0, lon0, sigma):
    lat = jnp.deg2rad(lat_grid)
    lon = jnp.deg2rad(lon_grid)
    lat0r = jnp.deg2rad(jnp.float32(lat0))
    lon0r = jnp.deg2rad(jnp.float32(lon0))
    dlat = lat - lat0r
    dlon = lon - lon0r
    a = jnp.sin(dlat / 2) ** 2 + jnp.cos(lat0r) * jnp.cos(lat) * jnp.sin(dlon / 2) ** 2
    c = 2 * jnp.arctan2(jnp.sqrt(a), jnp.sqrt(1 - a))
    D = R_EARTH * c
    w = jnp.exp(-((D / sigma) ** 2))
    w = w / w.sum()
    pooled = jnp.sum(features * w[None, None, :, :], axis=(2, 3))
    h = jnp.maximum(pooled @ params["w1"] + params["b1"], 0.0)
    logits = h @ params["w2"] + params["b2"]
    return jax.nn.softmax(logits, axis=1)


if __name__ == "__main__":
    # Small shapes consistent with the module:
    #   features (B, num_features, H, W); lat/lon grid (H, W); output (B, output_size).
    B, C, H, W, O = 2, 4, 16, 128, 256
    sigma = 500.0
    lat0, lon0 = 37.77, -122.42

    key = jax.random.PRNGKey(0)
    k_feat, k_w1, k_b1, k_w2, k_b2 = jax.random.split(key, 5)

    features = jax.random.normal(k_feat, (B, C, H, W), dtype=jnp.float32)

    # Grid buffers analogous to the registered lat/lon buffers (scaled down).
    lat_grid = jnp.tile(jnp.linspace(-90.0, 90.0, H, dtype=jnp.float32)[:, None], (1, W))
    lon_grid = jnp.tile(jnp.linspace(-180.0, 180.0, W, dtype=jnp.float32)[None, :], (H, 1))

    # Deterministic FeatureToOutput parameters (Linear(C,2C) -> ReLU -> Linear(2C,O)).
    hidden = 2 * C
    params = {
        "w1": jax.random.uniform(k_w1, (C, hidden), jnp.float32, -1.0, 1.0) / jnp.sqrt(C),
        "b1": jax.random.uniform(k_b1, (1, hidden), jnp.float32, -1.0, 1.0) / jnp.sqrt(C),
        "w2": jax.random.uniform(k_w2, (hidden, O), jnp.float32, -1.0, 1.0) / jnp.sqrt(hidden),
        "b2": jax.random.uniform(k_b2, (1, O), jnp.float32, -1.0, 1.0) / jnp.sqrt(hidden),
    }

    # tile_h=8 -> grid=(1, 2): exercises the pipelined spatial reduction + accumulator.
    out = probability_projection(features, lat_grid, lon_grid, params, lat0, lon0, sigma,
                                 tile_h=8)
    out = jax.block_until_ready(out)

    ref = reference(features, lat_grid, lon_grid, params, lat0, lon0, sigma)

    assert out.shape == (B, O), out.shape
    assert bool(jnp.allclose(jnp.sum(out, axis=1), 1.0, atol=1e-3)), "softmax rows must sum to 1"
    assert bool(jnp.allclose(out, ref, atol=1e-3)), "kernel deviates from reference"

    print("KERNEL_OK")
</pallas_src>

<mosaic_0001>
module attributes {stable_mosaic.version = 11 : i64} {
  func.func @weight_map_kernel(%arg0: memref<4xf32, #tpu.memory_space<smem>>, %arg1: memref<16x128xf32, #tpu.memory_space<vmem>>, %arg2: memref<16x128xf32, #tpu.memory_space<vmem>>, %arg3: memref<16x128xf32, #tpu.memory_space<vmem>>, %arg4: memref<1x1xf32, #tpu.memory_space<vmem>>) attributes {dimension_semantics = [], scalar_prefetch = 0 : i64, scratch_operands = 0 : i64, tpu.core_type = #tpu.core_type<tc>} {
    %c0 = arith.constant 0 : index
    %0 = memref.load %arg0[%c0] : memref<4xf32, #tpu.memory_space<smem>>
    %c1 = arith.constant 1 : index
    %1 = memref.load %arg0[%c1] : memref<4xf32, #tpu.memory_space<smem>>
    %c2 = arith.constant 2 : index
    %2 = memref.load %arg0[%c2] : memref<4xf32, #tpu.memory_space<smem>>
    %c3 = arith.constant 3 : index
    %3 = memref.load %arg0[%c3] : memref<4xf32, #tpu.memory_space<smem>>
    %c0_0 = arith.constant 0 : index
    %c0_1 = arith.constant 0 : index
    %4 = vector.load %arg1[%c0_0, %c0_1] : memref<16x128xf32, #tpu.memory_space<vmem>>, vector<16x128xf32>
    %cst = arith.constant 0.0174532924 : f32
    %5 = vector.broadcast %cst : f32 to vector<16x128xf32>
    %6 = arith.mulf %4, %5 : vector<16x128xf32>
    %c0_2 = arith.constant 0 : index
    %c0_3 = arith.constant 0 : index
    %7 = vector.load %arg2[%c0_2, %c0_3] : memref<16x128xf32, #tpu.memory_space<vmem>>, vector<16x128xf32>
    %cst_4 = arith.constant 0.0174532924 : f32
    %8 = vector.broadcast %cst_4 : f32 to vector<16x128xf32>
    %9 = arith.mulf %7, %8 : vector<16x128xf32>
    %10 = vector.broadcast %0 : f32 to vector<16x128xf32>
    %11 = arith.subf %6, %10 : vector<16x128xf32>
    %12 = vector.broadcast %1 : f32 to vector<16x128xf32>
    %13 = arith.subf %9, %12 : vector<16x128xf32>
    %cst_5 = arith.constant 5.000000e-01 : f32
    %14 = vector.broadcast %cst_5 : f32 to vector<16x128xf32>
    %15 = arith.mulf %11, %14 : vector<16x128xf32>
    %16 = math.sin %15 : vector<16x128xf32>
    %cst_6 = arith.constant 5.000000e-01 : f32
    %17 = vector.broadcast %cst_6 : f32 to vector<16x128xf32>
    %18 = arith.mulf %13, %17 : vector<16x128xf32>
    %19 = math.sin %18 : vector<16x128xf32>
    %20 = arith.mulf %16, %16 : vector<16x128xf32>
    %21 = math.cos %6 : vector<16x128xf32>
    %22 = vector.broadcast %2 : f32 to vector<16x128xf32>
    %23 = arith.mulf %22, %21 : vector<16x128xf32>
    %24 = arith.mulf %19, %19 : vector<16x128xf32>
    %25 = arith.mulf %23, %24 : vector<16x128xf32>
    %26 = arith.addf %20, %25 : vector<16x128xf32>
    %cst_7 = arith.constant 0.000000e+00 : f32
    %cst_8 = arith.constant 1.000000e+00 : f32
    %27 = vector.broadcast %cst_7 : f32 to vector<16x128xf32>
    %28 = arith.maximumf %27, %26 : vector<16x128xf32>
    %29 = vector.broadcast %cst_8 : f32 to vector<16x128xf32>
    %30 = arith.minimumf %29, %28 : vector<16x128xf32>
    %31 = math.sqrt %30 : vector<16x128xf32>
    %cst_9 = arith.constant 1.000000e+00 : f32
    %32 = vector.broadcast %cst_9 : f32 to vector<16x128xf32>
    %33 = arith.subf %32, %30 : vector<16x128xf32>
    %34 = math.sqrt %33 : vector<16x128xf32>
    %35 = math.atan2 %31, %34 : vector<16x128xf32>
    %cst_10 = arith.constant 2.000000e+00 : f32
    %36 = vector.broadcast %cst_10 : f32 to vector<16x128xf32>
    %37 = arith.mulf %36, %35 : vector<16x128xf32>
    %cst_11 = arith.constant 6.371000e+03 : f32
    %38 = vector.broadcast %cst_11 : f32 to vector<16x128xf32>
    %39 = arith.mulf %38, %37 : vector<16x128xf32>
    %40 = vector.broadcast %3 : f32 to vector<16x128xf32>
    %41 = arith.mulf %39, %40 : vector<16x128xf32>
    %42 = arith.mulf %41, %41 : vector<16x128xf32>
    %cst_12 = arith.constant 0.000000e+00 : f32
    %43 = vector.broadcast %cst_12 : f32 to vector<16x128xf32>
    %44 = arith.subf %43, %42 : vector<16x128xf32>
    %45 = math.exp %44 : vector<16x128xf32>
    %c0_13 = arith.constant 0 : index
    %c0_14 = arith.constant 0 : index
    %46 = vector.load %arg3[%c0_13, %c0_14] : memref<16x128xf32, #tpu.memory_space<vmem>>, vector<16x128xf32>
    tpu.vector_store %arg3[%c0_13, %c0_14], %45 {strides = array<i32>} : memref<16x128xf32, #tpu.memory_space<vmem>>, vector<16x128xf32>,
    %47 = vector.shape_cast %45 : vector<16x128xf32> to vector<1x16x128xf32>
    %cst_15 = arith.constant dense<0.000000e+00> : vector<1xf32>
    %48 = vector.multi_reduction <add>, %47, %cst_15 [1, 2] : vector<1x16x128xf32> to vector<1xf32>
    %49 = vector.shape_cast %48 : vector<1xf32> to vector<1x1x1xf32>
    %50 = vector.extract %49[0, 0, 0] : f32 from vector<1x1x1xf32>
    %51 = vector.broadcast %50 : f32 to vector<1x1xf32>
    %c0_16 = arith.constant 0 : index
    %c0_17 = arith.constant 0 : index
    %52 = vector.load %arg4[%c0_16, %c0_17] : memref<1x1xf32, #tpu.memory_space<vmem>>, vector<1x1xf32>
    tpu.vector_store %arg4[%c0_16, %c0_17], %51 {strides = array<i32>} : memref<1x1xf32, #tpu.memory_space<vmem>>, vector<1x1xf32>,
    return
  }
}

</mosaic_0001>

<bundles_post_ra>
// kernel: tpu_custom_call.1
= control target key start
LH: loop header
LB: loop body
LE: loop exit
PB: predicated region body
PF: predicated region fallthrough
CT: control target
= control target key end

     0   :  { %10 = vsyncpa [#allocation5], 0  ;;  %s1728_s0 = inlined_call_operand.hbm [shape: f32[4], index: 0, kind: input, shape index: {}]   ;;  %s1729_s1 = inlined_call_operand.hbm [shape: f32[16,128], index: 1, kind: input, shape index: {}]   ;;  %s1730_s2 = inlined_call_operand.hbm [shape: f32[16,128], index: 2, kind: input, shape index: {}]   ;;  %s1731_s3 = inlined_call_operand.hbm [shape: f32[16,128], index: 3, kind: output, shape index: {0}]   ;;  %s1732_s4 = inlined_call_operand.hbm [shape: f32[1,1], index: 4, kind: output, shape index: {1}]  }
   0x1   :  { %11 = vsyncpa [#allocation3], 0 }
   0x2   :  { %12 = vsyncpa [#allocation8], 0 }
   0x3   :  { %13 = vsyncpa [#allocation4], 0 }
   0x4   :  { %14 = vsyncpa [#allocation11], 0  ;;  %s1109_s15 = smov [#allocation2]   ;;  %s1110_s18 = smov [#allocation6]  }
   0x5   :  { %22 = dma.hbm_to_smem %s1728_s0, 16, %s1109_s15, [#allocation5]  }
   0x6   :  { %s28_s19 = sshll.u32 %s1110_s18, 4  ;;  %s29_s19 = int_to_ptr.vmem [resolvable:$true] %s28_s19 }
   0x7   :  { %s1027_s20 = scalar_lea.vmem %s29_s19, 256  ;;  %p1032_p1 = scmp.lt.s32.totalorder %s29_s19, %s29_s19 }
   0x8   :  { %p1028_p0 = scmp.ne.s32.totalorder %s29_s19, %s1027_s20  ;;  %p1033_p2 = scmp.lt.s32.totalorder %s1027_s20, %s1027_s20 }
   0xa   :  { %p1034_p3 = por %p1033_p2, %p1032_p1 }
   0xc   :  { %p1035_p4 = pnand %p1034_p3, %p1028_p0 }
   0xe   :  { %1038 = shalt.err (!%p1035_p4)
}
   0xf   :  { %s1111_s21 = smov 128   ;;  %s1112_s22 = smov 8  }
  0x10   :  { %34 = dma.hbm_to_vmem [thread:$0]  %s1729_s1, 256, %s29_s19, [#allocation3], %s1111_s21, %s1111_s21, %s1112_s22  }
  0x11   :  { %s1113_s0 = smov [#allocation7]  }
  0x12   :  { %s40_s25 = sshll.u32 %s1113_s0, 4  ;;  %s41_s25 = int_to_ptr.vmem [resolvable:$true] %s40_s25 }
  0x13   :  { %s1047_s26 = scalar_lea.vmem %s41_s25, 256  ;;  %p1052_p6 = scmp.lt.s32.totalorder %s41_s25, %s41_s25 }
  0x14   :  { %p1048_p5 = scmp.ne.s32.totalorder %s41_s25, %s1047_s26  ;;  %p1053_p7 = scmp.lt.s32.totalorder %s1047_s26, %s1047_s26 }
  0x16   :  { %p1054_p8 = por %p1053_p7, %p1052_p6 }
  0x18   :  { %p1055_p9 = pnand %p1054_p8, %p1048_p5 }
  0x1a   :  { %1058 = shalt.err (!%p1055_p9)
}
  0x1b   :  { %46 = dma.hbm_to_vmem [thread:$0]  %s1730_s2, 256, %s41_s25, [#allocation8], %s1111_s21, %s1111_s21, %s1112_s22  }
  0x1c   :  { %1099 = dma.done.wait [#allocation5], 16  }
  0x1d   :  { %1100 = vsyncadd [#allocation5], 4294967280 }
  0x1e   :  { %1101 = dma.done.wait [#allocation3], 256  }
  0x1f   :  { %1102 = vsyncadd [#allocation3], 4294967040 }
  0x20   :  { %1103 = dma.done.wait [#allocation8], 256  }
  0x21   :  { %1104 = vsyncadd [#allocation8], 4294967040 }
  0x22   :  { %56 = sfence }
  0x23   :  { %s57_s1 = sld [smem:[#allocation2]]  ;;  %v61_v0 = vld [vmem:[#allocation6] sm:$0xff]  ;;  %v62_v1 = vld [vmem:[#allocation6 + $0x8] sm:$0xff]  ;;  %v65_v4 = vld [vmem:[#allocation7] sm:$0xff]  ;;  %v1114_v30 = vmov 683565275  }
  0x24   :  { %s1164_s29 = sld [smem:[#allocation2 + $0x1]]  ;;  %v1166_v2 = vmul.f32 0.017453292, %v61_v0  ;;  %v1168_v3 = vmul.f32 0.017453292, %v62_v1  ;;  %s1122_s5 = smov [#allocation9]  }
  0x25   :  { %v67_v8 = vmul.f32 0.017453292, %v65_v4  ;;  %v1115_v32 = vmov 2475754826   ;;  %v1116_v34 = vmov 2131351028  }
  0x26   :  { %v1117_v36 = vmov 2102212464   ;;  %v1118_v38 = vmov 920167782   ;;  %v1119_v46 = vmov 1326507024  }
  0x27   :  { %s1613_s2 = sld [smem:[#allocation2 + $0x2]]  ;;  %s875_s6 = sshll.u32 %s1122_s5, 4  ;;  %s876_s6 = int_to_ptr.vmem [resolvable:$true] %s875_s6 }
  0x28   :  { %s1703_s30 = sld [smem:[#allocation2 + $0x3]]  ;;  %s1059_s7 = scalar_lea.vmem %s876_s6, 256 }
  0x29   :  { %v69_v5 = vstv %s57_s1  ;;  %p1060_p10 = scmp.ne.s32.totalorder %s876_s6, %s1059_s7  ;;  %p1064_p11 = scmp.lt.s32.totalorder %s876_s6, %s876_s6 }
  0x2a   :  { %v70_v6 = vsub.f32 %v1166_v2, %v69_v5  ;;  %v71_v7 = vsub.f32 %v1168_v3, %v69_v5  ;;  %v72_v9 = vstv %s1164_s29  ;;  %p1065_p12 = scmp.lt.s32.totalorder %s1059_s7, %s1059_s7 }
  0x2b   :  { %v73_v13 = vsub.f32 %v67_v8, %v72_v9 }
  0x2c   :  { %v1173_v10 = vmul.f32 0.5, %v70_v6  ;;  %v1175_v11 = vmul.f32 0.5, %v71_v7  ;;  %v66_v6 = vld [vmem:[#allocation7 + $0x8] sm:$0xff]  ;;  %p1066_p13 = por %p1065_p12, %p1064_p11 }
  0x2d   :  { %v1181_v19 = vmul.f32 0.5, %v73_v13 }
  0x2e   :  { %v80_v12 = vand.u32 2139095040, %v1173_v10  ;;  %v184_v14 = vand.u32 2139095040, %v1175_v11  ;;  %v77_v20 = vand.u32 2147483647, %v1173_v10  ;;  %p1067_p0 = pnand %p1066_p13, %p1060_p10 }
  0x2f   :  { %v290_v24 = vand.u32 2139095040, %v1181_v19 }
  0x30   :  { %v81_v15 = vshrl.u32 %v80_v12, 23  ;;  %v185_v16 = vshrl.u32 %v184_v14, 23  ;;  %v84_v25 = vand.u32 8388607, %v77_v20 }
  0x31   :  { %v291_v40 = vshrl.u32 %v290_v24, 23 }
  0x32   :  { %v906_v17 = vadd.s32 4294967169, %v81_v15  ;;  %v910_v18 = vadd.s32 4294967169, %v185_v16  ;;  %v85_v41 = vor.u32 8388608, %v84_v25 }
  0x33   :  { %v914_v54 = vadd.s32 4294967169, %v291_v40 }
  0x34   :  { %v87_v21 = vadd.s32 1, %v906_v17  ;;  %v191_v22 = vadd.s32 1, %v910_v18  ;;  %v125_v57 = vshll.u32 %v85_v41, 8 }
  0x35   :  { %v297_v5 = vadd.s32 1, %v914_v54 }
  0x36   :  { %vm88_vm0 = vcmp.gt.s32.totalorder %v87_v21, 0  ;;  %vm192_vm1 = vcmp.gt.s32.totalorder %v191_v22, 0 }
  0x37   :  { %v89_v23 = vsel %vm88_vm0, %v87_v21, 0  ;;  %v193_v28 = vsel %vm192_vm1, %v191_v22, 0  ;;  %v68_v22 = vmul.f32 0.017453292, %v66_v6  ;;  %vm298_vm6 = vcmp.gt.s32.totalorder %v297_v5, 0 }
  0x38   :  { %v91_v26 = vand.u32 31, %v89_v23  ;;  %v1187_v27 = vshrl.u32 %v89_v23, 5  ;;  %v195_v48 = vand.u32 31, %v193_v28  ;;  %v181_v23 = vand.u32 2147483647, %v1175_v11 }
  0x39   :  { %v1236_v24 = vshrl.u32 %v193_v28, 5  ;;  %v74_v41 = vsub.f32 %v68_v22, %v72_v9 }
  0x3a   :  { %v92_v29 = vsub.s32 32, %v91_v26  ;;  %v94_v31 = vshll.u32 %v1114_v30, %v91_v26  ;;  %v97_v33 = vshll.u32 %v1115_v32, %v91_v26  ;;  %v100_v35 = vshll.u32 %v1116_v34, %v91_v26 }
  0x3b   :  { %v103_v37 = vshll.u32 %v1117_v36, %v91_v26  ;;  %v106_v39 = vshll.u32 %v1118_v38, %v91_v26  ;;  %vm109_vm2 = vcmp.lt.s32.totalorder %v1187_v27, 1  ;;  %vm112_vm3 = vcmp.lt.s32.totalorder %v1187_v27, 4 }
  0x3c   :  { %v95_v42 = vshrl.u32 %v1115_v32, %v92_v29  ;;  %v98_v43 = vshrl.u32 %v1116_v34, %v92_v29  ;;  %v101_v44 = vshrl.u32 %v1117_v36, %v92_v29  ;;  %v104_v45 = vshrl.u32 %v1118_v38, %v92_v29 }
  0x3d   :  { %v107_v47 = vshrl.u32 %v1119_v46, %v92_v29  ;;  %vm111_vm4 = vcmp.lt.s32.totalorder %v1187_v27, 3  ;;  %vm110_vm5 = vcmp.lt.s32.totalorder %v1187_v27, 2  ;;  %v93_v58 = vshrl.u32 %v1114_v30, %v92_v29 }
  0x3e   :  { %v96_v49 = vor.u32 %v95_v42, %v94_v31  ;;  %v99_v50 = vor.u32 %v98_v43, %v97_v33  ;;  %v102_v51 = vor.u32 %v101_v44, %v100_v35  ;;  %v105_v52 = vor.u32 %v104_v45, %v103_v37 }
  0x3f   :  { %v108_v53 = vor.u32 %v107_v47, %v106_v39  ;;  %v1212_v0 = vsub.s32 32, %v195_v48  ;;  %v207_v16 = vshll.u32 %v1117_v36, %v195_v48  ;;  %v210_v18 = vshll.u32 %v1118_v38, %v195_v48 }
  0x40   :  { %v117_v55 = vsel %vm109_vm2, %v96_v49, %v99_v50  ;;  %v121_v56 = vsel %vm109_vm2, %v99_v50, %v102_v51  ;;  %v118_v59 = vsel %vm112_vm3, %v105_v52, 920167782  ;;  %v114_v61 = vsel %vm112_vm3, %v102_v51, 2102212464 }
  0x41   :  { %v122_v60 = vsel %vm112_vm3, %v108_v53, 1326507024  ;;  %v119_v62 = vsel %vm111_vm4, %v102_v51, %v118_v59  ;;  %v113_v14 = vsel %vm109_vm2, %v93_v58, %v96_v49  ;;  %v115_v15 = vsel %vm111_vm4, %v99_v50, %v114_v61 }
  0x42   :  { %v123_v63 = vsel %vm111_vm4, %v105_v52, %v122_v60  ;;  %v120_v1 = vsel %vm110_vm5, %v117_v55, %v119_v62  ;;  %v208_v17 = vshrl.u32 %v1118_v38, %v1212_v0  ;;  %v211_v21 = vshrl.u32 %v1119_v46, %v1212_v0 }
  0x43   :  { %v124_v4 = vsel %vm110_vm5, %v121_v56, %v123_v63  ;;  %v1221_v12 = vmul.u32.u64.low %v125_v57, %v120_v1  ;;  %v1222_v13 = vmul.u32.u64.high %v125_v57, %v120_v1, %v1221_v12  ;;  %v198_v25 = vshll.u32 %v1114_v30, %v195_v48 }
  0x44   :  { %v1218_v7 = vmul.u32.u64.low %v125_v57, %v124_v4  ;;  %v1219_v8 = vmul.u32.u64.high %v125_v57, %v124_v4, %v1218_v7  ;;  %v199_v26 = vshrl.u32 %v1115_v32, %v1212_v0  ;;  %v201_v29 = vshll.u32 %v1115_v32, %v195_v48 }
  0x45   :  { %v202_v31 = vshrl.u32 %v1116_v34, %v1212_v0  ;;  %v116_v33 = vsel %vm110_vm5, %v113_v14, %v115_v15  ;;  %v135_v35 = vadd.s32 1, %v1222_v13  ;;  %v204_v37 = vshll.u32 %v1116_v34, %v195_v48 }
  0x46   :  { %v205_v28 = vshrl.u32 %v1117_v36, %v1212_v0  ;;  %vm134_vm7 = vc.u32 %v1219_v8, %v1221_v12  ;;  %v209_v39 = vor.u32 %v208_v17, %v207_v16  ;;  %v212_v40 = vor.u32 %v211_v21, %v210_v18 }
  0x47   :  { %v188_v42 = vand.u32 8388607, %v181_v23  ;;  %vm216_vm8 = vcmp.lt.s32.totalorder %v1236_v24, 4  ;;  %v132_v27 = vmul.u32 %v125_v57, %v116_v33  ;;  %v1257_v43 = vor.u32 %v199_v26, %v198_v25 }
  0x48   :  { %v1259_v44 = vor.u32 %v202_v31, %v201_v29  ;;  %v299_v45 = vsel %vm298_vm6, %v297_v5, 0  ;;  %v136_v47 = vsel %vm134_vm7, %v135_v35, %v1222_v13  ;;  %v206_v48 = vor.u32 %v205_v28, %v204_v37 }
  0x49   :  { %vm213_vm9 = vcmp.lt.s32.totalorder %v1236_v24, 1  ;;  %vm215_vm10 = vcmp.lt.s32.totalorder %v1236_v24, 3  ;;  %v222_v9 = vsel %vm216_vm8, %v209_v39, 920167782  ;;  %v226_v49 = vsel %vm216_vm8, %v212_v40, 1326507024 }
  0x4a   :  { %v1269_v50 = vmul.f32 0.5, %v74_v41  ;;  %v287_v51 = vand.u32 2147483647, %v1181_v19  ;;  %v301_v52 = vand.u32 31, %v299_v45  ;;  %v137_v53 = vadd.s32 %v136_v47, %v132_v27 }
  0x4b   :  { %v189_v54 = vor.u32 8388608, %v188_v42  ;;  %vm214_vm11 = vcmp.lt.s32.totalorder %v1236_v24, 2  ;;  %v221_v55 = vsel %vm213_vm9, %v1257_v43, %v1259_v44  ;;  %v223_v56 = vsel %vm215_vm10, %v206_v48, %v222_v9 }
  0x4c   :  { %v225_v57 = vsel %vm213_vm9, %v1259_v44, %v206_v48  ;;  %v227_v58 = vsel %vm215_vm10, %v209_v39, %v226_v49  ;;  %v302_v59 = vsub.s32 32, %v301_v52  ;;  %v294_v60 = vand.u32 8388607, %v287_v51 }
  0x4d   :  { %v394_v61 = vand.u32 2139095040, %v1269_v50  ;;  %v138_v62 = vadd.s32 536870912, %v137_v53  ;;  %v224_v63 = vsel %vm214_vm11, %v221_v55, %v223_v56  ;;  %v228_v1 = vsel %vm214_vm11, %v225_v57, %v227_v58 }
  0x4e   :  { %v1291_v4 = vshll.u32 %v189_v54, 8  ;;  %v300_v5 = vshrl.u32 %v299_v45, 5  ;;  %v304_v6 = vshll.u32 %v1114_v30, %v301_v52  ;;  %v305_v7 = vshrl.u32 %v1115_v32, %v302_v59 }
  0x4f   :  { %v307_v13 = vshll.u32 %v1115_v32, %v301_v52  ;;  %v308_v14 = vshrl.u32 %v1116_v34, %v302_v59  ;;  %v310_v15 = vshll.u32 %v1116_v34, %v301_v52  ;;  %v311_v16 = vshrl.u32 %v1117_v36, %v302_v59 }
  0x50   :  { %v313_v17 = vshll.u32 %v1117_v36, %v301_v52  ;;  %v295_v18 = vor.u32 8388608, %v294_v60  ;;  %v314_v21 = vshrl.u32 %v1118_v38, %v302_v59  ;;  %v395_v22 = vshrl.u32 %v394_v61, 23 }
  0x51   :  { %v1302_v25 = vmul.u32.u64.low %v1291_v4, %v224_v63  ;;  %v1303_v26 = vmul.u32.u64.high %v1291_v4, %v224_v63, %v1302_v25  ;;  %v316_v29 = vshll.u32 %v1118_v38, %v301_v52  ;;  %v317_v31 = vshrl.u32 %v1119_v46, %v302_v59 }
  0x52   :  { %v1308_v33 = vshrl.u32 %v138_v62, 30  ;;  %v1311_v35 = vmul.u32.u64.low %v1291_v4, %v228_v1  ;;  %v1312_v37 = vmul.u32.u64.high %v1291_v4, %v228_v1, %v1311_v35  ;;  %vm322_vm12 = vcmp.lt.s32.totalorder %v300_v5, 4 }
  0x53   :  { %v306_v28 = vor.u32 %v305_v7, %v304_v6  ;;  %v309_v39 = vor.u32 %v308_v14, %v307_v13  ;;  %v312_v40 = vor.u32 %v311_v16, %v310_v15  ;;  %v315_v41 = vor.u32 %v314_v21, %v313_v17 }
  0x54   :  { %v197_v42 = vshrl.u32 %v1114_v30, %v1212_v0  ;;  %v318_v27 = vor.u32 %v317_v31, %v316_v29  ;;  %vm319_vm13 = vcmp.lt.s32.totalorder %v300_v5, 1  ;;  %vm321_vm14 = vcmp.lt.s32.totalorder %v300_v5, 3 }
  0x55   :  { %v218_v45 = vsel %vm216_vm8, %v206_v48, 2102212464  ;;  %v303_v47 = vshrl.u32 %v1114_v30, %v302_v59  ;;  %v328_v9 = vsel %vm322_vm12, %v315_v41, 920167782  ;;  %v140_v49 = vshll.u32 %v1308_v33, 30 }
  0x56   :  { %vm320_vm15 = vcmp.lt.s32.totalorder %v300_v5, 2  ;;  %v918_v52 = vadd.s32 4294967169, %v395_v22  ;;  %v324_v54 = vsel %vm322_vm12, %v312_v40, 2102212464  ;;  %v327_v55 = vsel %vm319_vm13, %v306_v28, %v309_v39 }
  0x57   :  { %v329_v0 = vsel %vm321_vm14, %v312_v40, %v328_v9  ;;  %v331_v56 = vsel %vm319_vm13, %v309_v39, %v312_v40  ;;  %v217_v48 = vsel %vm213_vm9, %v197_v42, %v1257_v43  ;;  %v219_v57 = vsel %vm215_vm10, %v1259_v44, %v218_v45 }
  0x58   :  { %v332_v58 = vsel %vm322_vm12, %v318_v27, 1326507024  ;;  %v335_v59 = vshll.u32 %v295_v18, 8  ;;  %v323_v60 = vsel %vm319_vm13, %v303_v47, %v306_v28  ;;  %v325_v62 = vsel %vm321_vm14, %v309_v39, %v324_v54 }
  0x59   :  { %v333_v61 = vsel %vm321_vm14, %v315_v41, %v332_v58  ;;  %v330_v63 = vsel %vm320_vm15, %v327_v55, %v329_v0  ;;  %v401_v6 = vadd.s32 1, %v918_v52  ;;  %v1337_v7 = vsub.s32 %v137_v53, %v140_v49 }
  0x5a   :  { %v334_v1 = vsel %vm320_vm15, %v331_v56, %v333_v61  ;;  %v220_v43 = vsel %vm214_vm11, %v217_v48, %v219_v57  ;;  %v239_v44 = vadd.s32 1, %v1303_v26  ;;  %vm238_vm0 = vc.u32 %v1312_v37, %v1302_v25 }
  0x5b   :  { %v1344_v13 = vmul.u32.u64.low %v335_v59, %v334_v1  ;;  %v1345_v14 = vmul.u32.u64.high %v335_v59, %v334_v1, %v1344_v13  ;;  %v326_v15 = vsel %vm320_vm15, %v323_v60, %v325_v62  ;;  %vm402_vm1 = vcmp.gt.s32.totalorder %v401_v6, 0 }
  0x5c   :  { %v1348_v16 = vmul.u32.u64.low %v335_v59, %v330_v63  ;;  %v1349_v17 = vmul.u32.u64.high %v335_v59, %v330_v63, %v1348_v16  ;;  %v236_v53 = vmul.u32 %v1291_v4, %v220_v43  ;;  %v403_v18 = vsel %vm402_vm1, %v401_v6, 0 }
  0x5d   :  { %v143_v24 = vsub.s32 0, %v1337_v7  ;;  %v240_v21 = vsel %vm238_vm0, %v239_v44, %v1303_v26  ;;  %v391_v22 = vand.u32 2147483647, %v1269_v50  ;;  %v405_v29 = vand.u32 31, %v403_v18 }
  0x5e   :  { %v342_v31 = vmul.u32 %v335_v59, %v326_v15  ;;  %vm344_vm2 = vc.u32 %v1345_v14, %v1348_v16  ;;  %v345_v5 = vadd.s32 1, %v1349_v17  ;;  %v241_v35 = vadd.s32 %v240_v21, %v236_v53 }
  0x5f   :  { %v406_v28 = vsub.s32 32, %v405_v29  ;;  %v907_v39 = vmin.u32 %v143_v24, %v1337_v7  ;;  %v398_v40 = vand.u32 8388607, %v391_v22  ;;  %v500_v26 = vand.u32 2139095040, %v1166_v2 }
  0x60   :  { %v346_v4 = vsel %vm344_vm2, %v345_v5, %v1349_v17  ;;  %v408_v42 = vshll.u32 %v1114_v30, %v405_v29  ;;  %v411_v45 = vshll.u32 %v1115_v32, %v405_v29  ;;  %v242_v9 = vadd.s32 536870912, %v241_v35 }
  0x61   :  { %v347_v41 = vadd.s32 %v346_v4, %v342_v31  ;;  %v409_v27 = vshrl.u32 %v1115_v32, %v406_v28  ;;  %v412_v47 = vshrl.u32 %v1116_v34, %v406_v28  ;;  %v404_v52 = vshrl.u32 %v403_v18, 5 }
  0x62   :  { %v417_v54 = vshll.u32 %v1117_v36, %v405_v29  ;;  %v145_v55 = vclz %v907_v39  ;;  %v399_v0 = vor.u32 8388608, %v398_v40  ;;  %v414_v56 = vshll.u32 %v1116_v34, %v405_v29 }
  0x63   :  { %v348_v49 = vadd.s32 536870912, %v347_v41  ;;  %v415_v48 = vshrl.u32 %v1117_v36, %v406_v28  ;;  %v418_v58 = vshrl.u32 %v1118_v38, %v406_v28  ;;  %v410_v59 = vor.u32 %v409_v27, %v408_v42 }
  0x64   :  { %v413_v60 = vor.u32 %v412_v47, %v411_v45  ;;  %v420_v61 = vshll.u32 %v1118_v38, %v405_v29  ;;  %v421_v62 = vshrl.u32 %v1119_v46, %v406_v28  ;;  %v1376_v63 = vshrl.u32 %v242_v9, 30 }
  0x65   :  { %v1371_v57 = vshrl.u32 %v348_v49, 30  ;;  %v419_v6 = vor.u32 %v418_v58, %v417_v54  ;;  %vm423_vm3 = vcmp.lt.s32.totalorder %v404_v52, 1  ;;  %v908_v43 = vadd.s32 4294967294, %v145_v55 }
  0x66   :  { %v416_v44 = vor.u32 %v415_v48, %v414_v56  ;;  %v439_v13 = vshll.u32 %v399_v0, 8  ;;  %v501_v15 = vshrl.u32 %v500_v26, 23  ;;  %v407_v53 = vshrl.u32 %v1114_v30, %v406_v28 }
  0x67   :  { %v350_v1 = vshll.u32 %v1371_v57, 30  ;;  %vm425_vm4 = vcmp.lt.s32.totalorder %v404_v52, 3  ;;  %vm426_vm5 = vcmp.lt.s32.totalorder %v404_v52, 4  ;;  %v422_v18 = vor.u32 %v421_v62, %v420_v61 }
  0x68   :  { %vm424_vm6 = vcmp.lt.s32.totalorder %v404_v52, 2  ;;  %v428_v24 = vsel %vm426_vm5, %v416_v44, 2102212464  ;;  %v431_v21 = vsel %vm423_vm3, %v410_v59, %v413_v60  ;;  %v244_v29 = vshll.u32 %v1376_v63, 30 }
  0x69   :  { %v1379_v17 = vsub.s32 %v347_v41, %v350_v1  ;;  %v432_v5 = vsel %vm426_vm5, %v419_v6, 920167782  ;;  %vm909_vm7 = vcmp.lt.s32.totalorder %v908_v43, 0  ;;  %v922_v4 = vadd.s32 4294967169, %v501_v15 }
  0x6a   :  { %v433_v39 = vsel %vm425_vm4, %v416_v44, %v432_v5  ;;  %v427_v40 = vsel %vm423_vm3, %v407_v53, %v410_v59  ;;  %v429_v41 = vsel %vm425_vm4, %v413_v60, %v428_v24  ;;  %v435_v42 = vsel %vm423_vm3, %v413_v60, %v416_v44 }
  0x6b   :  { %v353_v31 = vsub.s32 0, %v1379_v17  ;;  %v434_v26 = vsel %vm424_vm6, %v431_v21, %v433_v39  ;;  %v436_v27 = vsel %vm426_vm5, %v422_v18, 1326507024  ;;  %v1398_v9 = vsub.s32 %v241_v35, %v244_v29 }
  0x6c   :  { %v1394_v45 = vmul.u32.u64.low %v439_v13, %v434_v26  ;;  %v1395_v47 = vmul.u32.u64.high %v439_v13, %v434_v26, %v1394_v45  ;;  %v148_v49 = vsel %vm909_vm7, 0, %v908_v43  ;;  %v437_v54 = vsel %vm425_vm4, %v419_v6, %v436_v27 }
  0x6d   :  { %v915_v28 = vmin.u32 %v353_v31, %v1379_v17  ;;  %v507_v55 = vadd.s32 1, %v922_v4  ;;  %v430_v56 = vsel %vm424_vm6, %v427_v40, %v429_v41  ;;  %v438_v48 = vsel %vm424_vm6, %v435_v42, %v437_v54 }
  0x6e   :  { %v1403_v58 = vmul.u32.u64.low %v439_v13, %v438_v48  ;;  %v1404_v59 = vmul.u32.u64.high %v439_v13, %v438_v48, %v1403_v58  ;;  %v153_v60 = vsub.s32 4294967266, %v148_v49  ;;  %v247_v61 = vsub.s32 0, %v1398_v9 }
  0x6f   :  { %v355_v0 = vclz %v915_v28  ;;  %vm508_vm8 = vcmp.gt.s32.totalorder %v507_v55, 0  ;;  %v449_v62 = vadd.s32 1, %v1395_v47  ;;  %v446_v1 = vmul.u32 %v439_v13, %v430_v56 }
  0x70   :  { %v509_v35 = vsel %vm508_vm8, %v507_v55, 0  ;;  %v133_v6 = vadd.s32 %v1221_v12, %v1219_v8  ;;  %vm448_vm9 = vc.u32 %v1404_v59, %v1394_v45  ;;  %v497_v52 = vand.u32 2147483647, %v1166_v2 }
  0x71   :  { %v511_v43 = vand.u32 31, %v509_v35  ;;  %v916_v44 = vadd.s32 4294967294, %v355_v0  ;;  %v149_v15 = vsub.s32 32, %v148_v49  ;;  %v154_v53 = vadd.s32 127, %v153_v60 }
  0x72   :  { %v911_v18 = vmin.u32 %v247_v61, %v1398_v9  ;;  %v450_v24 = vsel %vm448_vm9, %v449_v62, %v1395_v47  ;;  %v504_v31 = vand.u32 8388607, %v497_v52  ;;  %v150_v8 = vshll.u32 %v1337_v7, %v148_v49 }
  0x73   :  { %v451_v21 = vadd.s32 %v450_v24, %v446_v1  ;;  %v512_v29 = vsub.s32 32, %v511_v43  ;;  %vm917_vm10 = vcmp.lt.s32.totalorder %v916_v44, 0  ;;  %v151_v12 = vshrl.u32 %v133_v6, %v149_v15 }
  0x74   :  { %v155_v5 = vshll.u32 %v154_v53, 23  ;;  %v249_v39 = vclz %v911_v18  ;;  %v358_v4 = vsel %vm917_vm10, 0, %v916_v44  ;;  %v514_v40 = vshll.u32 %v1114_v30, %v511_v43 }
  0x75   :  { %v452_v13 = vadd.s32 536870912, %v451_v21  ;;  %v515_v41 = vshrl.u32 %v1115_v32, %v512_v29  ;;  %v517_v26 = vshll.u32 %v1115_v32, %v511_v43  ;;  %v518_v42 = vshrl.u32 %v1116_v34, %v512_v29 }
  0x76   :  { %v523_v27 = vshll.u32 %v1117_v36, %v511_v43  ;;  %v524_v47 = vshrl.u32 %v1118_v38, %v512_v29  ;;  %v510_v49 = vshrl.u32 %v509_v35, 5  ;;  %v520_v54 = vshll.u32 %v1116_v34, %v511_v43 }
  0x77   :  { %v1418_v28 = vshrl.u32 %v452_v13, 30  ;;  %v521_v55 = vshrl.u32 %v1117_v36, %v512_v29  ;;  %v505_v0 = vor.u32 8388608, %v504_v31  ;;  %v603_v56 = vand.u32 2139095040, %v1168_v3 }
  0x78   :  { %v152_v48 = vor.u32 %v151_v12, %v150_v8  ;;  %v912_v58 = vadd.s32 4294967294, %v249_v39  ;;  %v526_v60 = vshll.u32 %v1118_v38, %v511_v43  ;;  %v527_v61 = vshrl.u32 %v1119_v46, %v512_v29 }
  0x79   :  { %v454_v7 = vshll.u32 %v1418_v28, 30  ;;  %v363_v62 = vsub.s32 4294967266, %v358_v4  ;;  %v516_v1 = vor.u32 %v515_v41, %v514_v40  ;;  %v519_v44 = vor.u32 %v518_v42, %v517_v26 }
  0x7a   :  { %v525_v6 = vor.u32 %v524_v47, %v523_v27  ;;  %v156_v15 = vor.u32 4788187, %v155_v5  ;;  %v522_v35 = vor.u32 %v521_v55, %v520_v54  ;;  %vm529_vm11 = vcmp.lt.s32.totalorder %v510_v49, 1 }
  0x7b   :  { %v1432_v53 = vsub.s32 %v451_v21, %v454_v7  ;;  %v343_v18 = vadd.s32 %v1348_v16, %v1345_v14  ;;  %v513_v24 = vshrl.u32 %v1114_v30, %v512_v29  ;;  %vm532_vm12 = vcmp.lt.s32.totalorder %v510_v49, 4 }
  0x7c   :  { %v545_v13 = vshll.u32 %v505_v0, 8  ;;  %v359_v31 = vsub.s32 32, %v358_v4  ;;  %v528_v43 = vor.u32 %v527_v61, %v526_v60  ;;  %vm531_vm13 = vcmp.lt.s32.totalorder %v510_v49, 3 }
  0x7d   :  { %v534_v8 = vsel %vm532_vm12, %v522_v35, 2102212464  ;;  %v364_v12 = vadd.s32 127, %v363_v62  ;;  %vm530_vm14 = vcmp.lt.s32.totalorder %v510_v49, 2  ;;  %v537_v5 = vsel %vm529_vm11, %v516_v1, %v519_v44 }
  0x7e   :  { %v538_v21 = vsel %vm532_vm12, %v525_v6, 920167782  ;;  %v157_v39 = vand.u32 2147483647, %v156_v15  ;;  %v159_v40 = vcvt.s32.f32 %v152_v48  ;;  %vm913_vm15 = vcmp.lt.s32.totalorder %v912_v58, 0 }
  0x7f   :  { %v457_v14 = vsub.s32 0, %v1432_v53  ;;  %v533_v16 = vsel %vm529_vm11, %v513_v24, %v516_v1  ;;  %v535_v29 = vsel %vm531_vm13, %v519_v44, %v534_v8  ;;  %v539_v41 = vsel %vm531_vm13, %v522_v35, %v538_v21 }
  0x80   :  { %v541_v26 = vsel %vm529_vm11, %v519_v44, %v522_v35  ;;  %v360_v42 = vshll.u32 %v1379_v17, %v358_v4  ;;  %v361_v27 = vshrl.u32 %v343_v18, %v359_v31  ;;  %v540_v47 = vsel %vm530_vm14, %v537_v5, %v539_v41 }
  0x81   :  { %v542_v7 = vsel %vm532_vm12, %v528_v43, 1326507024  ;;  %v365_v54 = vshll.u32 %v364_v12, 23  ;;  %v1449_v0 = vmul.u32.u64.low %v545_v13, %v540_v47  ;;  %v1450_v48 = vmul.u32.u64.high %v545_v13, %v540_v47, %v1449_v0 }
  0x82   :  { %v543_v55 = vsel %vm531_vm13, %v525_v6, %v542_v7  ;;  %v919_v60 = vmin.u32 %v457_v14, %v1432_v53  ;;  %v536_v61 = vsel %vm530_vm14, %v533_v16, %v535_v29  ;;  %v604_v1 = vshrl.u32 %v603_v56, 23 }
  0x83   :  { %v544_v62 = vsel %vm530_vm14, %v541_v26, %v543_v55  ;;  %v1460_v44 = vsel %vm913_vm15, 0, %v912_v58  ;;  %v362_v35 = vor.u32 %v361_v27, %v360_v42  ;;  %v366_v6 = vor.u32 4788187, %v365_v54 }
  0x84   :  { %v1456_v17 = vmul.u32.u64.low %v545_v13, %v544_v62  ;;  %v1457_v4 = vmul.u32.u64.high %v545_v13, %v544_v62, %v1456_v17  ;;  %v926_v15 = vadd.s32 4294967169, %v604_v1  ;;  %v552_v18 = vmul.u32 %v545_v13, %v536_v61 }
  0x85   :  { %v555_v24 = vadd.s32 1, %v1450_v48  ;;  %v160_v31 = vmul.f32 %v159_v40, %v157_v39  ;;  %v459_v43 = vclz %v919_v60  ;;  %v600_v49 = vand.u32 2147483647, %v1168_v3 }
  0x86   :  { %v610_v8 = vadd.s32 1, %v926_v15  ;;  %vm554_vm0 = vc.u32 %v1457_v4, %v1449_v0  ;;  %v237_v56 = vadd.s32 %v1302_v25, %v1312_v37  ;;  %v257_v58 = vsub.s32 4294967266, %v1460_v44 }
  0x87   :  { %v556_v12 = vsel %vm554_vm0, %v555_v24, %v1450_v48  ;;  %v367_v5 = vand.u32 2147483647, %v366_v6  ;;  %v369_v13 = vcvt.s32.f32 %v362_v35  ;;  %v161_v39 = vxor.u32 2147483648, %v160_v31 }
  0x88   :  { %vm611_vm1 = vcmp.gt.s32.totalorder %v610_v8, 0  ;;  %v557_v21 = vadd.s32 %v556_v12, %v552_v18  ;;  %v253_v40 = vsub.s32 32, %v1460_v44  ;;  %v920_v16 = vadd.s32 4294967294, %v459_v43 }
  0x89   :  { %v612_v14 = vsel %vm611_vm1, %v610_v8, 0  ;;  %vm79_vm2 = vcmp.lt.s32.totalorder %v1173_v10, 0  ;;  %v607_v25 = vand.u32 8388607, %v600_v49  ;;  %vm1476_vm3 = vcmp.le.f32.partialorder %v77_v20, 0.7853982 }
  0x8a   :  { %v614_v29 = vand.u32 31, %v612_v14  ;;  %v558_v41 = vadd.s32 536870912, %v557_v21  ;;  %v1480_v26 = vadd.s32 127, %v257_v58  ;;  %vm289_vm4 = vcmp.lt.s32.totalorder %v1181_v19, 0 }
  0x8b   :  { %v163_v27 = vsub.s32 4, %v1308_v33  ;;  %v254_v47 = vshll.u32 %v1398_v9, %v1460_v44  ;;  %v370_v7 = vmul.f32 %v369_v13, %v367_v5  ;;  %v162_v55 = vsel %vm79_vm2, %v161_v39, %v160_v31 }
  0x8c   :  { %v615_v42 = vsub.s32 32, %v614_v29  ;;  %v1486_v54 = vshrl.u32 %v558_v41, 30  ;;  %v1490_v20 = vshrl.u32 %v237_v56, %v253_v40  ;;  %vm921_vm5 = vcmp.lt.s32.totalorder %v920_v16, 0 }
  0x8d   :  { %v617_v48 = vshll.u32 %v1114_v30, %v614_v29  ;;  %v620_v62 = vshll.u32 %v1115_v32, %v614_v29  ;;  %v259_v17 = vshll.u32 %v1480_v26, 23  ;;  %v613_v15 = vshrl.u32 %v612_v14, 5 }
  0x8e   :  { %v560_v60 = vshll.u32 %v1486_v54, 30  ;;  %v618_v61 = vshrl.u32 %v1115_v32, %v615_v42  ;;  %v621_v1 = vshrl.u32 %v1116_v34, %v615_v42  ;;  %v623_v35 = vshll.u32 %v1116_v34, %v614_v29 }
  0x8f   :  { %v624_v6 = vshrl.u32 %v1117_v36, %v615_v42  ;;  %v165_v18 = vsel %vm1476_vm3, %v1173_v10, %v162_v55  ;;  %v371_v24 = vxor.u32 2147483648, %v370_v7  ;;  %v626_v43 = vshll.u32 %v1117_v36, %v614_v29 }
  0x90   :  { %v1503_v31 = vsub.s32 %v557_v21, %v560_v60  ;;  %v1506_v8 = vsel %vm921_vm5, 0, %v920_v16  ;;  %v608_v32 = vor.u32 8388608, %v607_v25  ;;  %v616_v56 = vshrl.u32 %v1114_v30, %v615_v42 }
  0x91   :  { %v627_v58 = vshrl.u32 %v1118_v38, %v615_v42  ;;  %vm1512_vm6 = vcmp.le.f32.partialorder %v287_v51, 0.7853982  ;;  %v619_v5 = vor.u32 %v618_v61, %v617_v48  ;;  %v622_v13 = vor.u32 %v621_v1, %v620_v62 }
  0x92   :  { %v563_v12 = vsub.s32 0, %v1503_v31  ;;  %v629_v21 = vshll.u32 %v1118_v38, %v614_v29  ;;  %v625_v36 = vor.u32 %v624_v6, %v623_v35  ;;  %v630_v39 = vshrl.u32 %v1119_v46, %v615_v42 }
  0x93   :  { %v628_v14 = vor.u32 %v627_v58, %v626_v43  ;;  %vm632_vm7 = vcmp.lt.s32.totalorder %v613_v15, 1  ;;  %v372_v30 = vsel %vm289_vm4, %v371_v24, %v370_v7  ;;  %v447_v51 = vadd.s32 %v1394_v45, %v1404_v59 }
  0x94   :  { %v467_v40 = vsub.s32 4294967266, %v1506_v8  ;;  %v923_v16 = vmin.u32 %v563_v12, %v1503_v31  ;;  %v631_v41 = vor.u32 %v630_v39, %v629_v21  ;;  %vm633_vm8 = vcmp.lt.s32.totalorder %v613_v15, 2 }
  0x95   :  { %vm634_vm9 = vcmp.lt.s32.totalorder %v613_v15, 3  ;;  %v648_v25 = vshll.u32 %v608_v32, 8  ;;  %vm635_vm10 = vcmp.lt.s32.totalorder %v613_v15, 4  ;;  %v636_v29 = vsel %vm632_vm7, %v616_v56, %v619_v5 }
  0x96   :  { %v565_v38 = vclz %v923_v16  ;;  %v640_v26 = vsel %vm632_vm7, %v619_v5, %v622_v13  ;;  %v637_v46 = vsel %vm635_vm10, %v625_v36, 2102212464  ;;  %v641_v42 = vsel %vm635_vm10, %v628_v14, 920167782 }
  0x97   :  { %v644_v55 = vsel %vm632_vm7, %v622_v13, %v625_v36  ;;  %v645_v48 = vsel %vm635_vm10, %v631_v41, 1326507024  ;;  %v638_v60 = vsel %vm634_vm9, %v622_v13, %v637_v46  ;;  %v642_v61 = vsel %vm634_vm9, %v625_v36, %v641_v42 }
  0x98   :  { %v924_v7 = vadd.s32 4294967294, %v565_v38  ;;  %v646_v45 = vsel %vm634_vm9, %v628_v14, %v645_v48  ;;  %v463_v59 = vsub.s32 32, %v1506_v8  ;;  %v468_v62 = vadd.s32 127, %v467_v40 }
  0x99   :  { %v643_v1 = vsel %vm633_vm8, %v640_v26, %v642_v61  ;;  %v647_v35 = vsel %vm633_vm8, %v644_v55, %v646_v45  ;;  %v553_v6 = vadd.s32 %v1449_v0, %v1457_v4  ;;  %v639_v56 = vsel %vm633_vm8, %v636_v29, %v638_v60 }
  0x9a   :  { %vm925_vm11 = vcmp.lt.s32.totalorder %v924_v7, 0  ;;  %v1530_v24 = vmul.u32.u64.low %v648_v25, %v647_v35  ;;  %v1531_v43 = vmul.u32.u64.high %v648_v25, %v647_v35, %v1530_v24  ;;  %971 = vcosq.f32 %v165_v18 }
  0x9b   :  { %v568_v32 = vsel %vm925_vm11, 0, %v924_v7  ;;  %v1534_v58 = vmul.u32.u64.low %v648_v25, %v643_v1  ;;  %v1535_v12 = vmul.u32.u64.high %v648_v25, %v643_v1, %v1534_v58  ;;  %973 = vsinq.f32 %v165_v18 }
  0x9c   :  { %v569_v5 = vsub.s32 32, %v568_v32  ;;  %v570_v13 = vshll.u32 %v1503_v31, %v568_v32  ;;  %v573_v21 = vsub.s32 4294967266, %v568_v32  ;;  %v256_v0 = vor.u32 %v1490_v20, %v254_v47 }
  0x9d   :  { %v260_v4 = vor.u32 4788187, %v259_v17  ;;  %v375_v15 = vsel %vm1512_vm6, %v1181_v19, %v372_v30  ;;  %v655_v39 = vmul.u32 %v648_v25, %v639_v56  ;;  %vm657_vm12 = vc.u32 %v1531_v43, %v1534_v58 }
  0x9e   :  { %v571_v36 = vshrl.u32 %v553_v6, %v569_v5  ;;  %v574_v14 = vadd.s32 127, %v573_v21  ;;  %v464_v31 = vshll.u32 %v1432_v53, %v1506_v8  ;;  %v465_v18 = vshrl.u32 %v447_v51, %v463_v59 }
  0x9f   :  { %v469_v40 = vshll.u32 %v468_v62, 23  ;;  %v658_v9 = vadd.s32 1, %v1535_v12  ;;  %v373_v44 = vsub.s32 4, %v1371_v57  ;;  %975 = vcosq.f32 %v375_v15 }
  0xa0   :  { %v572_v47 = vor.u32 %v571_v36, %v570_v13  ;;  %v575_v20 = vshll.u32 %v574_v14, 23  ;;  %977 = vsinq.f32 %v375_v15  ;;  %v164_v53 = vsel %vm79_vm2, %v163_v27, %v1308_v33 }
  0xa1   :  { %v659_v17 = vsel %vm657_vm12, %v658_v9, %v1535_v12  ;;  %v263_v8 = vcvt.s32.f32 %v256_v0  ;;  %v466_v51 = vor.u32 %v465_v18, %v464_v31  ;;  %v470_v25 = vor.u32 4788187, %v469_v40 }
  0xa2   :  { %v576_v30 = vor.u32 4788187, %v575_v20  ;;  %v579_v16 = vcvt.s32.f32 %v572_v47  ;;  %v660_v41 = vadd.s32 %v659_v17, %v655_v39  ;;  %v261_v38 = vand.u32 2147483647, %v260_v4 }
  0xa3   :  { %v374_v29 = vsel %vm289_vm4, %v373_v44, %v1371_v57  ;;  %v166_v42 = vsel %vm1476_vm3, 0, %v164_v53  ;;  %v471_v33 = vand.u32 2147483647, %v470_v25  ;;  %v473_v27 = vcvt.s32.f32 %v466_v51 }
  0xa4   :  { %v577_v26 = vand.u32 2147483647, %v576_v30  ;;  %v661_v46 = vadd.s32 536870912, %v660_v41  ;;  %v376_v7 = vsel %vm1512_vm6, 0, %v374_v29  ;;  %vm499_vm13 = vcmp.lt.s32.totalorder %v1166_v2, 0 }
  0xa5   :  { %v264_v60 = vmul.f32 %v263_v8, %v261_v38  ;;  %vm1570_vm14 = vcmp.le.f32.partialorder %v497_v52, 0.7853982  ;;  %v170_v59 = vadd.s32 3, %v166_v42  ;;  %v380_v1 = vadd.s32 3, %v376_v7 }
  0xa6   :  { %v580_v55 = vmul.f32 %v579_v16, %v577_v26  ;;  %v1563_v48 = vshrl.u32 %v661_v46, 30  ;;  %v474_v6 = vmul.f32 %v473_v27, %v471_v33  ;;  %v583_v24 = vsub.s32 4, %v1486_v54 }
  0xa7   :  { %v972_v45 = vpop.eup %971  ;;  %v265_v32 = vxor.u32 2147483648, %v264_v60  ;;  %v171_v5 = vand.u32 3, %v170_v59  ;;  %vm183_vm15 = vcmp.lt.s32.totalorder %v1175_v11, 0  ;;  %vm1587_vm0 = vcmp.le.f32.partialorder %v181_v23, 0.7853982 }
  0xa8   :  { %v581_v61 = vxor.u32 2147483648, %v580_v55  ;;  %v663_v37 = vshll.u32 %v1563_v48, 30  ;;  %v974_v62 = vpop.eup %973  ;;  %v381_v0 = vand.u32 3, %v380_v1  ;;  %vm1594_vm1 = vcmp.le.f32.partialorder %v391_v22, 0.7853982 }
  0xa9   :  { %vm393_vm2 = vcmp.lt.s32.totalorder %v1269_v50, 0  ;;  %v475_v36 = vxor.u32 2147483648, %v474_v6  ;;  %v584_v14 = vsel %vm499_vm13, %v583_v24, %v1486_v54  ;;  %v174_v23 = vxor.u32 2147483648, %v974_v62 }
  0xaa   :  { %v582_v34 = vsel %vm499_vm13, %v581_v61, %v580_v55  ;;  %v1577_v35 = vsub.s32 %v660_v41, %v663_v37  ;;  %v177_v39 = vxor.u32 2147483648, %v972_v45  ;;  %v266_v31 = vsel %vm183_vm15, %v265_v32, %v264_v60 }
  0xab   :  { %v585_v52 = vsel %vm1570_vm14, %v1166_v2, %v582_v34  ;;  %vm173_vm3 = vcmp.eq.s32.totalorder %v171_v5, 0  ;;  %vm176_vm4 = vcmp.eq.s32.totalorder %v171_v5, 2  ;;  %vm383_vm5 = vcmp.eq.s32.totalorder %v381_v0, 0 }
  0xac   :  { %979 = vcosq.f32 %v585_v52  ;;  %v666_v56 = vsub.s32 0, %v1577_v35  ;;  %v976_v12 = vpop.eup %975  ;;  %vm386_vm6 = vcmp.eq.s32.totalorder %v381_v0, 2  ;;  %v586_v9 = vsel %vm1570_vm14, 0, %v584_v14 }
  0xad   :  { %981 = vsinq.f32 %v585_v52  ;;  %v978_v13 = vpop.eup %977  ;;  %v387_v22 = vxor.u32 2147483648, %v976_v12  ;;  %vm172_vm7 = vcmp.lt.s32.totalorder %v171_v5, 2  ;;  %v269_v54 = vsel %vm1587_vm0, %v1175_v11, %v266_v31 }
  0xae   :  { %v927_v4 = vmin.u32 %v666_v56, %v1577_v35  ;;  %v384_v40 = vxor.u32 2147483648, %v978_v13  ;;  %vm382_vm8 = vcmp.lt.s32.totalorder %v381_v0, 2  ;;  %v476_v47 = vsel %vm393_vm2, %v475_v36, %v474_v6 }
  0xaf   :  { %v175_v20 = vsel %vm173_vm3, %v972_v45, %v174_v23  ;;  %v178_v17 = vsel %vm176_vm4, %v177_v39, %v974_v62  ;;  %v656_v30 = vadd.s32 %v1534_v58, %v1531_v43  ;;  %v388_v41 = vsel %vm386_vm6, %v387_v22, %v978_v13 }
  0xb0   :  { %v668_v18 = vclz %v927_v4  ;;  %v385_v16 = vsel %vm383_vm5, %v976_v12, %v384_v40  ;;  %v590_v53 = vand.u32 3, %v586_v9  ;;  %v479_v51 = vsel %vm1594_vm1, %v1269_v50, %v476_v47 }
  0xb1   :  { %vm169_vm10 = vweird.f32 %v1173_v10  ;;  %v267_v26 = vsub.s32 4, %v1376_v63  ;;  %983 = vcosq.f32 %v269_v54  ;;  %vm379_vm11 = vweird.f32 %v1181_v19 }
  0xb2   :  { %v928_v44 = vadd.s32 4294967294, %v668_v18  ;;  %985 = vsinq.f32 %v269_v54  ;;  %v389_v43 = vsel %vm382_vm8, %v385_v16, %v388_v41  ;;  %v179_v55 = vsel %vm172_vm7, %v175_v20, %v178_v17 }
  0xb3   :  { %v477_v7 = vsub.s32 4, %v1418_v28  ;;  %987 = vcosq.f32 %v479_v51  ;;  %vm595_vm12 = vcmp.eq.s32.totalorder %v590_v53, 2  ;;  %vm592_vm13 = vcmp.eq.s32.totalorder %v590_v53, 0 }
  0xb4   :  { %vm929_vm9 = vcmp.lt.s32.totalorder %v928_v44, 0  ;;  %v390_v61 = vsel %vm379_vm11, nan, %v389_v43  ;;  %989 = vsinq.f32 %v479_v51  ;;  %vm591_vm14 = vcmp.lt.s32.totalorder %v590_v53, 2 }
  0xb5   :  { %v671_v8 = vsel %vm929_vm9, 0, %v928_v44  ;;  %vm589_vm3 = vweird.f32 %v1166_v2  ;;  %v180_v62 = vsel %vm169_vm10, nan, %v179_v55  ;;  %v703_v34 = vstv %s1613_s2 }
  0xb6   :  { %v672_v25 = vsub.s32 32, %v671_v8  ;;  %v673_v38 = vshll.u32 %v1577_v35, %v671_v8  ;;  %v676_v29 = vsub.s32 4294967266, %v671_v8  ;;  %v478_v35 = vsel %vm393_vm2, %v477_v7, %v1418_v28 }
  0xb7   :  { %v706_v52 = vmul.f32 %v390_v61, %v390_v61  ;;  %v268_v32 = vsel %vm183_vm15, %v267_v26, %v1376_v63  ;;  %v495_v56 = vmul.f32 %v180_v62, %v180_v62  ;;  %v480_v10 = vsel %vm1594_vm1, 0, %v478_v35 }
  0xb8   :  { %v674_v58 = vshrl.u32 %v656_v30, %v672_v25  ;;  %v677_v46 = vadd.s32 127, %v676_v29  ;;  %vm602_vm4 = vcmp.lt.s32.totalorder %v1168_v3, 0  ;;  %v270_v28 = vsel %vm1587_vm0, 0, %v268_v32 }
  0xb9   :  { %v980_v42 = vpop.eup %979  ;;  %vm1644_vm2 = vcmp.le.f32.partialorder %v600_v49, 0.7853982  ;;  %v484_v36 = vadd.s32 3, %v480_v10  ;;  %v274_v39 = vadd.s32 3, %v270_v28  ;;  %v686_v31 = vsub.s32 4, %v1563_v48 }
  0xba   :  { %v982_v33 = vpop.eup %981  ;;  %v596_v27 = vxor.u32 2147483648, %v980_v42  ;;  %v675_v60 = vor.u32 %v674_v58, %v673_v38  ;;  %v678_v57 = vshll.u32 %v677_v46, 23  ;;  %vm483_vm8 = vweird.f32 %v1269_v50 }
  0xbb   :  { %v593_v19 = vxor.u32 2147483648, %v982_v33  ;;  %v485_v22 = vand.u32 3, %v484_v36  ;;  %v275_v44 = vand.u32 3, %v274_v39  ;;  %v687_v54 = vsel %vm602_vm4, %v686_v31, %v1563_v48 }
  0xbc   :  { %v597_v37 = vsel %vm595_vm12, %v596_v27, %v982_v33  ;;  %v679_v45 = vor.u32 4788187, %v678_v57  ;;  %v682_v59 = vcvt.s32.f32 %v675_v60  ;;  %v689_v41 = vsel %vm1644_vm2, 0, %v687_v54 }
  0xbd   :  { %v594_v1 = vsel %vm592_vm13, %v980_v42, %v593_v19  ;;  %vm487_vm15 = vcmp.eq.s32.totalorder %v485_v22, 0  ;;  %vm490_vm0 = vcmp.eq.s32.totalorder %v485_v22, 2  ;;  %vm277_vm1 = vcmp.eq.s32.totalorder %v275_v44, 0 }
  0xbe   :  { %v598_v6 = vsel %vm591_vm14, %v594_v1, %v597_v37  ;;  %v680_v24 = vand.u32 2147483647, %v679_v45  ;;  %v984_v4 = vpop.eup %983  ;;  %vm280_vm5 = vcmp.eq.s32.totalorder %v275_v44, 2  ;;  %vm486_vm6 = vcmp.lt.s32.totalorder %v485_v22, 2 }
  0xbf   :  { %v599_v2 = vsel %vm589_vm3, nan, %v598_v6  ;;  %v986_v23 = vpop.eup %985  ;;  %v281_v47 = vxor.u32 2147483648, %v984_v4  ;;  %v693_v51 = vand.u32 3, %v689_v41  ;;  %vm276_vm7 = vcmp.lt.s32.totalorder %v275_v44, 2 }
  0xc0   :  { %v683_v12 = vmul.f32 %v682_v59, %v680_v24  ;;  %v704_v5 = vmul.f32 %v703_v34, %v599_v2  ;;  %v988_v49 = vpop.eup %987  ;;  %v278_v16 = vxor.u32 2147483648, %v986_v23  ;;  %vm273_vm9 = vweird.f32 %v1175_v11 }
  0xc1   :  { %v990_v40 = vpop.eup %989  ;;  %v491_v17 = vxor.u32 2147483648, %v988_v49  ;;  %v282_v25 = vsel %vm280_vm5, %v281_v47, %v986_v23  ;;  %vm698_vm10 = vcmp.eq.s32.totalorder %v693_v51, 2  ;;  %vm695_vm11 = vcmp.eq.s32.totalorder %v693_v51, 0 }
  0xc2   :  { %v684_v63 = vxor.u32 2147483648, %v683_v12  ;;  %v708_v0 = vmul.f32 %v706_v52, %v704_v5  ;;  %v488_v20 = vxor.u32 2147483648, %v990_v40  ;;  %v279_v48 = vsel %vm277_vm1, %v984_v4, %v278_v16 }
  0xc3   :  { %v492_v8 = vsel %vm490_vm0, %v491_v17, %v990_v40  ;;  %v283_v26 = vsel %vm276_vm7, %v279_v48, %v282_v25  ;;  %vm694_vm12 = vcmp.lt.s32.totalorder %v693_v51, 2  ;;  %vm692_vm13 = vweird.f32 %v1168_v3 }
  0xc4   :  { %v685_v14 = vsel %vm602_vm4, %v684_v63, %v683_v12  ;;  %v710_v15 = vadd.f32 %v708_v0, %v495_v56  ;;  %v489_v53 = vsel %vm487_vm15, %v988_v49, %v488_v20  ;;  %v284_v55 = vsel %vm273_vm9, nan, %v283_v26 }
  0xc5   :  { %v688_v21 = vsel %vm1644_vm2, %v1168_v3, %v685_v14  ;;  %v493_v38 = vsel %vm486_vm6, %v489_v53, %v492_v8  ;;  %v496_v61 = vmul.f32 %v284_v55, %v284_v55 }
  0xc6   :  { %991 = vcosq.f32 %v688_v21  ;;  %v712_v18 = vmax.f32 %v710_v15, 0.0  ;;  %v494_v46 = vsel %vm483_vm8, nan, %v493_v38 }
  0xc7   :  { %993 = vsinq.f32 %v688_v21  ;;  %v707_v57 = vmul.f32 %v494_v46, %v494_v46 }
  0xc8   :  { %v714_v9 = vmin.f32 %v712_v18, 1.0 }
  0xca   :  { %995 = vrsqrt.f32 %v714_v9  ;;  %v730_v30 = vsub.f32 1.0, %v714_v9  ;;  %vm718_vm14 = vcmp.eq.f32.partialorder %v714_v9, inf  ;;  %v721_v50 = vand.u32 2147483648, %v714_v9 }
  0xcb   :  { %vm720_vm3 = vcmp.eq.f32.partialorder %v714_v9, 0.0 }
  0xcc   :  { %997 = vrsqrt.f32 %v730_v30  ;;  %vm734_vm4 = vcmp.eq.f32.partialorder %v730_v30, inf  ;;  %v737_v62 = vand.u32 2147483648, %v730_v30  ;;  %vm736_vm2 = vcmp.eq.f32.partialorder %v730_v30, 0.0 }
  0xd3   :  { %v992_v29 = vpop.eup %991 }
  0xd4   :  { %v994_v43 = vpop.eup %993  ;;  %v699_v58 = vxor.u32 2147483648, %v992_v29 }
  0xd5   :  { %v696_v42 = vxor.u32 2147483648, %v994_v43 }
  0xd6   :  { %v700_v7 = vsel %vm698_vm10, %v699_v58, %v994_v43 }
  0xd7   :  { %v996_v33 = vpop.eup %995  ;;  %v697_v27 = vsel %vm695_vm11, %v992_v29, %v696_v42 }
  0xd8   :  { %v701_v60 = vsel %vm694_vm12, %v697_v27, %v700_v7  ;;  %v717_v11 = vmul.f32 %v996_v33, %v714_v9 }
  0xd9   :  { %v702_v19 = vsel %vm692_vm13, nan, %v701_v60  ;;  %v998_v37 = vpop.eup %997 }
  0xda   :  { %v705_v45 = vmul.f32 %v703_v34, %v702_v19  ;;  %v719_v59 = vsel %vm718_vm14, %v714_v9, %v717_v11  ;;  %v733_v3 = vmul.f32 %v998_v37, %v730_v30  ;;  %v1120_v19 = vmov 0.0  }
  0xdb   :  { %v1664_v1 = vsel %vm720_vm3, %v721_v50, %v719_v59 }
  0xdc   :  { %v709_v35 = vmul.f32 %v707_v57, %v705_v45  ;;  %v735_v6 = vsel %vm734_vm4, %v730_v30, %v733_v3  ;;  %v1667_v24 = vand.u32 2147483647, %v1664_v1  ;;  %vm781_vm9 = vcmp.ne.f32.partialorder %v1664_v1, %v1664_v1 }
  0xdd   :  { %v1669_v32 = vsel %vm736_vm2, %v737_v62, %v735_v6  ;;  %vm778_vm13 = vcmp.eq.f32.partialorder %v1664_v1, 0.0  ;;  %v1121_v62 = vmov 0.7853982  }
  0xde   :  { %v711_v52 = vadd.f32 %v709_v35, %v496_v61  ;;  %v1672_v2 = vand.u32 2147483647, %v1669_v32  ;;  %vm776_vm7 = vcmp.lt.s32.totalorder %v1669_v32, 0  ;;  %vm780_vm8 = vcmp.ne.f32.partialorder %v1669_v32, %v1669_v32 }
  0xdf   :  { %vm787_vm10 = vcmp.eq.s32.totalorder %v1667_v24, inf  ;;  %vm773_vm11 = vcmp.lt.f32.partialorder %v1669_v32, 0.0  ;;  %v777_v37 = vsel %vm776_vm7, 3.1415927, %v1120_v19  ;;  %vm782_vm14 = vmor %vm780_vm8, %vm781_vm9 }
  0xe0   :  { %v713_v56 = vmax.f32 %v711_v52, 0.0  ;;  %v749_v34 = vmax.f32 %v1672_v2, %v1667_v24  ;;  %v748_v10 = vmin.f32 %v1672_v2, %v1667_v24  ;;  %vm770_vm6 = vcmp.gt.f32.partialorder %v1667_v24, %v1672_v2 }
  0xe1   :  { %vm786_vm12 = vcmp.eq.s32.totalorder %v1672_v2, inf  ;;  %v785_v3 = vsel %vm773_vm11, 2.3561945, %v1121_v62  ;;  %v791_v52 = vand.u32 2147483648, %v1664_v1 }
  0xe2   :  { %v715_v12 = vmin.f32 %v713_v56, 1.0  ;;  %999 = vrcp.f32 %v749_v34  ;;  %vm788_vm3 = vmand %vm786_vm12, %vm787_vm10 }
  0xe4   :  { %1001 = vrsqrt.f32 %v715_v12  ;;  %v731_v5 = vsub.f32 1.0, %v715_v12  ;;  %vm725_vm15 = vcmp.eq.f32.partialorder %v715_v12, inf  ;;  %v728_v63 = vand.u32 2147483648, %v715_v12 }
  0xe5   :  { %vm727_vm0 = vcmp.eq.f32.partialorder %v715_v12, 0.0 }
  0xe6   :  { %1003 = vrsqrt.f32 %v731_v5  ;;  %vm741_vm1 = vcmp.eq.f32.partialorder %v731_v5, inf  ;;  %v744_v23 = vand.u32 2147483648, %v731_v5  ;;  %vm743_vm5 = vcmp.eq.f32.partialorder %v731_v5, 0.0 }
  0xef   :  { %v1000_v28 = vpop.eup %999 }
  0xf0   :  { %v751_v0 = vmul.f32 %v1000_v28, %v748_v10 }
  0xf1   :  { %v1002_v13 = vpop.eup %1001 }
  0xf2   :  { %v724_v4 = vmul.f32 %v1002_v13, %v715_v12  ;;  %v752_v36 = vmul.f32 %v751_v0, %v751_v0  ;;  %v844_v13 = vstv %s1703_s30 }
  0xf3   :  { %v1004_v14 = vpop.eup %1003 }
  0xf4   :  { %v726_v15 = vsel %vm725_vm15, %v715_v12, %v724_v4  ;;  %v740_v31 = vmul.f32 %v1004_v14, %v731_v5  ;;  %v753_v21 = vmul.f32 0.002785687, %v752_v36 }
  0xf5   :  { %v1678_v39 = vsel %vm727_vm0, %v728_v63, %v726_v15 }
  0xf6   :  { %v742_v49 = vsel %vm741_vm1, %v731_v5, %v740_v31  ;;  %v754_v18 = vadd.f32 -0.015866, %v753_v21  ;;  %v1681_v40 = vand.u32 2147483647, %v1678_v39  ;;  %vm828_vm0 = vcmp.ne.f32.partialorder %v1678_v39, %v1678_v39 }
  0xf7   :  { %v1683_v22 = vsel %vm743_vm5, %v744_v23, %v742_v49  ;;  %vm825_vm7 = vcmp.eq.f32.partialorder %v1678_v39, 0.0 }
  0xf8   :  { %v755_v9 = vmul.f32 %v754_v18, %v752_v36  ;;  %v1686_v44 = vand.u32 2147483647, %v1683_v22  ;;  %vm823_vm2 = vcmp.lt.s32.totalorder %v1683_v22, 0  ;;  %vm827_vm15 = vcmp.ne.f32.partialorder %v1683_v22, %v1683_v22 }
  0xf9   :  { %vm820_vm1 = vcmp.lt.f32.partialorder %v1683_v22, 0.0  ;;  %vm829_vm8 = vmor %vm827_vm15, %vm828_vm0 }
  0xfa   :  { %v756_v54 = vadd.f32 0.04247222, %v755_v9  ;;  %v796_v47 = vmax.f32 %v1686_v44, %v1681_v40  ;;  %v795_v8 = vmin.f32 %v1686_v44, %v1681_v40  ;;  %vm817_vm4 = vcmp.gt.f32.partialorder %v1681_v40, %v1686_v44 }
  0xfb   :  { %vm833_vm5 = vcmp.eq.s32.totalorder %v1686_v44, inf }
  0xfc   :  { %v757_v20 = vmul.f32 %v756_v54, %v752_v36  ;;  %1005 = vrcp.f32 %v796_v47  ;;  %v824_v54 = vsel %vm823_vm2, 3.1415927, %v1120_v19 }
  0xfe   :  { %v758_v17 = vadd.f32 -0.074975304, %v757_v20  ;;  %v832_v20 = vsel %vm820_vm1, 2.3561945, %v1121_v62 }
 0x100   :  { %v759_v30 = vmul.f32 %v758_v17, %v752_v36 }
 0x102   :  { %v760_v16 = vadd.f32 0.1064488, %v759_v30 }
 0x104   :  { %v761_v41 = vmul.f32 %v760_v16, %v752_v36  ;;  %v838_v16 = vand.u32 2147483648, %v1678_v39 }
 0x106   :  { %v762_v53 = vadd.f32 -0.14207031, %v761_v41 }
 0x108   :  { %v763_v51 = vmul.f32 %v762_v53, %v752_v36 }
 0x109   :  { %v1006_v48 = vpop.eup %1005 }
 0x10a   :  { %v764_v25 = vadd.f32 0.19993454, %v763_v51  ;;  %v798_v38 = vmul.f32 %v1006_v48, %v795_v8 }
 0x10c   :  { %v765_v29 = vmul.f32 %v764_v25, %v752_v36  ;;  %v799_v26 = vmul.f32 %v798_v38, %v798_v38 }
 0x10e   :  { %v766_v43 = vadd.f32 -0.33333147, %v765_v29  ;;  %v800_v58 = vmul.f32 0.002785687, %v799_v26 }
 0x110   :  { %v767_v46 = vmul.f32 %v766_v43, %v752_v36  ;;  %v801_v42 = vadd.f32 -0.015866, %v800_v58 }
 0x112   :  { %v768_v55 = vmul.f32 %v767_v46, %v751_v0  ;;  %v802_v7 = vmul.f32 %v801_v42, %v799_v26 }
 0x114   :  { %v769_v33 = vadd.f32 %v768_v55, %v751_v0  ;;  %v803_v27 = vadd.f32 0.04247222, %v802_v7 }
 0x116   :  { %v771_v50 = vsub.f32 1.5707964, %v769_v33  ;;  %v804_v60 = vmul.f32 %v803_v27, %v799_v26 }
 0x118   :  { %v772_v57 = vsel %vm770_vm6, %v771_v50, %v769_v33  ;;  %v805_v11 = vadd.f32 -0.074975304, %v804_v60  ;;  %vm834_vm6 = vcmp.eq.s32.totalorder %v1681_v40, inf }
 0x119   :  { %v774_v61 = vsub.f32 3.1415927, %v772_v57  ;;  %vm835_vm9 = vmand %vm833_vm5, %vm834_vm6 }
 0x11a   :  { %v806_v45 = vmul.f32 %v805_v11, %v799_v26 }
 0x11b   :  { %v775_v59 = vsel %vm773_vm11, %v774_v61, %v772_v57 }
 0x11c   :  { %v779_v35 = vsel %vm778_vm13, %v777_v37, %v775_v59  ;;  %v807_v6 = vadd.f32 0.1064488, %v806_v45 }
 0x11d   :  { %v783_v24 = vsel %vm782_vm14, nan, %v779_v35 }
 0x11e   :  { %v789_v32 = vsel %vm788_vm3, %v785_v3, %v783_v24  ;;  %v808_v2 = vmul.f32 %v807_v6, %v799_v26 }
 0x11f   :  { %v790_v56 = vand.u32 2147483647, %v789_v32 }
 0x120   :  { %v809_v34 = vadd.f32 -0.14207031, %v808_v2 }
 0x121   :  { %v792_v12 = vor.u32 %v791_v52, %v790_v56 }
 0x122   :  { %v810_v5 = vmul.f32 %v809_v34, %v799_v26 }
 0x123   :  { %v840_v10 = vmul.f32 2.0, %v792_v12 }
 0x124   :  { %v811_v28 = vadd.f32 0.19993454, %v810_v5 }
 0x125   :  { %v842_v63 = vmul.f32 6371.0, %v840_v10 }
 0x126   :  { %v812_v0 = vmul.f32 %v811_v28, %v799_v26 }
 0x127   :  { %v845_v4 = vmul.f32 %v844_v13, %v842_v63 }
 0x128   :  { %v813_v36 = vadd.f32 -0.33333147, %v812_v0 }
 0x129   :  { %v847_v14 = vmul.f32 %v845_v4, %v845_v4 }
 0x12a   :  { %v814_v15 = vmul.f32 %v813_v36, %v799_v26 }
 0x12b   :  { %v849_v23 = vsub.f32 0.0, %v847_v14 }
 0x12c   :  { %v815_v31 = vmul.f32 %v814_v15, %v798_v38 }
 0x12d   :  { %v851_v21 = vmul.f32 1.442695, %v849_v23 }
 0x12e   :  { %v816_v49 = vadd.f32 %v815_v31, %v798_v38 }
 0x12f   :  { %1007 = vpow2.f32 %v851_v21 }
 0x130   :  { %v818_v1 = vsub.f32 1.5707964, %v816_v49 }
 0x132   :  { %v819_v18 = vsel %vm817_vm4, %v818_v1, %v816_v49 }
 0x133   :  { %v821_v9 = vsub.f32 3.1415927, %v819_v18 }
 0x135   :  { %v822_v47 = vsel %vm820_vm1, %v821_v9, %v819_v18 }
 0x136   :  { %v826_v17 = vsel %vm825_vm7, %v824_v54, %v822_v47 }
 0x137   :  { %v830_v30 = vsel %vm829_vm8, nan, %v826_v17 }
 0x138   :  { %v836_v41 = vsel %vm835_vm9, %v832_v20, %v830_v30 }
 0x139   :  { %v837_v53 = vand.u32 2147483647, %v836_v41 }
 0x13b   :  { %v839_v8 = vor.u32 %v838_v16, %v837_v53 }
 0x13c   :  { %v1008_v22 = vpop.eup %1007 }
 0x13d   :  { %v841_v51 = vmul.f32 2.0, %v839_v8  ;;  %855 = vst [vmem:[#allocation9] sm:$0xff] %v1008_v22 }
 0x13f   :  { %v843_v44 = vmul.f32 6371.0, %v841_v51 }
 0x141   :  { %v846_v40 = vmul.f32 %v844_v13, %v843_v44 }
 0x143   :  { %v848_v48 = vmul.f32 %v846_v40, %v846_v40 }
 0x145   :  { %v850_v25 = vsub.f32 0.0, %v848_v48 }
 0x147   :  { %v853_v38 = vmul.f32 1.442695, %v850_v25 }
 0x149   :  { %1009 = vpow2.f32 %v853_v38 }
 0x156   :  { %v1010_v29 = vpop.eup %1009 }
 0x157   :  { %856 = vst [vmem:[#allocation9 + $0x8] sm:$0xff] %v1010_v29  ;;  %v857_v26 = vadd.f32 %v1010_v29, %v1008_v22 }
 0x159   :  { %858 = vadd.xlane.f32.xlu0 %v857_v26 }
 0x15a   :  { %1070 = shalt.err (!%p1067_p0)
}
 0x15b   :  { %881 = dma.vmem_to_hbm [thread:$0]  %s876_s6, 256, %s1731_s3, [#allocation4], %s1111_s21, %s1111_s21, %s1112_s22   ;;  %vm868_vm10 = vcmask 0  }
 0x15c   :  { %s1123_s10 = smov [#allocation10]  }
 0x15d   :  { %s888_s11 = sshll.u32 %s1123_s10, 4  ;;  %s889_s11 = int_to_ptr.vmem [resolvable:$true] %s888_s11 }
 0x15e   :  { %s1079_s13 = scalar_lea.vmem %s889_s11, 16  ;;  %s1083_s14 = scalar_lea.vmem %s889_s11, 32 }
 0x15f   :  { %p1080_p1 = scmp.ne.s32.totalorder %s889_s11, %s1079_s13  ;;  %p1084_p2 = scmp.lt.s32.totalorder %s889_s11, %s889_s11 }
 0x160   :  { %p1085_p3 = scmp.lt.s32.totalorder %s1083_s14, %s1079_s13 }
 0x162   :  { %p1086_p4 = por %p1085_p3, %p1084_p2 }
 0x164   :  { %p1087_p5 = pnand %p1086_p4, %p1080_p1 }
 0x1e2   :  { %v859_v39 = vpop.xlane.xlu0 %858 }
 0x1e3   :  { %v860_v43 = vrot.slane %v859_v39, 4 }
 0x1e5   :  { %v861_v58 = vadd.f32 %v860_v43, %v859_v39 }
 0x1e7   :  { %v862_v46 = vrot.slane %v861_v58, 2 }
 0x1e9   :  { %v863_v42 = vadd.f32 %v862_v46, %v861_v58 }
 0x1eb   :  { %v864_v55 = vrot.slane %v863_v42, 1 }
 0x1ed   :  { %v865_v7 = vadd.f32 %v864_v55, %v863_v42 }
 0x1ef   :  { %954 = vpush %v865_v7 }
 0x220   :  { %s955_s12 = spop %954 }
 0x221   :  { %v867_v33 = vstv %s955_s12 }
 0x222   :  { %869 = vst.msk [vmem:[#allocation10] sm:$0x1] %vm868_vm10, %v867_v33 }
 0x223   :  { %1090 = shalt.err (!%p1087_p5)
}
 0x224   :  { %891 = dma.vmem_to_hbm [thread:$0]  %s889_s11, 16, %s1732_s4, [#allocation11]  }
 0x225   :  { %1105 = dma.done.wait [#allocation4], 256  }
 0x226   :  { %1106 = vsyncadd [#allocation4], 4294967040 }
 0x227   :  { %1107 = dma.done.wait [#allocation11], 16  }
 0x228   :  { %1108 = vsyncadd [#allocation11], 4294967280 }
 0x229   :  { %898 = vsyncpa [#allocation3], 1 }
 0x22a   :  { %899 = vsyncpa [#allocation8], 1 }
 0x22b   :  { %900 = vsyncpa [#allocation4], 1 }
 0x22c   :  { %901 = vsyncpa [#allocation11], 1 }
 0x22d   :  { %902 = vsyncpa [#allocation5], 1 }

</bundles_post_ra>
